<compile_context>
chip_gen: v7x
topology: tpu7x:2x2x1
jax: 0.10.0
libtpu: 0.0.40
codegen_flags: <defaults>
</compile_context>

<pallas_src>
from functools import partial

import jax
import jax.numpy as jnp
from jax.experimental import pallas as pl
from jax.experimental.pallas import tpu as pltpu


# -----------------------------------------------------------------------------
# Kernel
# -----------------------------------------------------------------------------
def dueling_kernel(x_ref, w_ref, f_ref, o_ref, *, w_off, f_row):
    """Forward pass on one batch block; all operands resident in VMEM.

    x_ref : (B, 128) f32   lanes 0..31 img, 32 speed, 33..34 action, rest zero
    w_ref : (10*128, 128) bf16   matmul weights, each zero-padded to (128,128)
    f_ref : (16, 128) f32        biases + VPU weights, one zero-padded row each
    """

    def W(name):
        off = w_off[name]                         # static Python int
        return w_ref[off:off + 128, :]            # (128,128) bf16, tile aligned

    def F(name):
        r = f_row[name]                           # static Python int
        return f_ref[r:r + 1, :]                  # (1,128) f32, zero padded

    def dot(x, name):
        # single-pass bf16 MXU matmul, f32 accumulation (no HIGHEST decomposition)
        return jnp.dot(x.astype(jnp.bfloat16), W(name),
                       preferred_element_type=jnp.float32)

    x = x_ref[...]                                # (B, 128) f32

    spd = x[:, 32:33]                             # (B, 1)
    a0 = x[:, 33:34]                              # (B, 1)
    a1 = x[:, 34:35]                              # (B, 1)

    # --- speed_encoder: Linear(1,8)+ReLU -> Linear(8,8) -----------------------
    # K=1: broadcast FMA on the VPU, no MXU round trip.  Padded lanes stay 0.
    s = jnp.maximum(spd * F("sw1") + F("sb1"), 0.0)            # (B, 128)
    spd_embed = dot(s, "sw2") + F("sb2")                       # (B, 128)

    # --- action_encoder: Linear(2,64)+ReLU -> Linear(64,64)+ReLU -> Linear(64,32)
    # K=2: two broadcast FMAs instead of an MXU dot.
    a = jnp.maximum(a0 * F("aw1_0") + a1 * F("aw1_1") + F("ab1"), 0.0)
    a = jnp.maximum(dot(a, "aw2") + F("ab2"), 0.0)             # (B, 128)
    act_embed = dot(a, "aw3") + F("ab3")                       # (B, 128)

    # --- A_network -------------------------------------------------------------
    # concat([img, spd, act]) @ qw1 as a sum of partial dots.  x can be used
    # directly for the img part: rows 32..127 of the padded qw1a block are zero,
    # so the speed/action lanes of x contribute nothing.
    h = dot(x, "qw1a") + dot(spd_embed, "qw1b") + dot(act_embed, "qw1c") + F("qb1")
    h = jnp.maximum(h, 0.0)                                    # (B, 128)
    h = jnp.maximum(dot(h, "qw2") + F("qb2"), 0.0)
    h = jnp.maximum(dot(h, "qw3") + F("qb3"), 0.0)
    h = jnp.maximum(dot(h, "qw4") + F("qb4"), 0.0)
    h = jnp.maximum(dot(h, "qw5") + F("qb5"), 0.0)

    # Final Linear(32,1): elementwise multiply + lane reduction (no MXU).
    q = jnp.sum(h * F("qw6t"), axis=-1, keepdims=True) + F("qb6")[:, 0:1]
    o_ref[...] = q                                              # (B, 1)


# -----------------------------------------------------------------------------
# Parameter construction / packing
# -----------------------------------------------------------------------------
def init_linear(key, fan_in, fan_out):
    """Deterministic PyTorch-style uniform(-1/sqrt(fan_in), 1/sqrt(fan_in)) init."""
    kw, kb = jax.random.split(key)
    bound = 1.0 / (fan_in ** 0.5)
    w = jax.random.uniform(kw, (fan_in, fan_out), jnp.float32, -bound, bound)
    b = jax.random.uniform(kb, (1, fan_out), jnp.float32, -bound, bound)
    return w, b


def make_params(key):
    sizes = [
        (1, 8), (8, 8),                                             # speed_encoder
        (2, 64), (64, 64), (64, 32),                                # action_encoder
        (72, 32), (32, 64), (64, 64), (64, 32), (32, 32), (32, 1),  # A_network
    ]
    keys = jax.random.split(key, len(sizes))
    params = []
    for k, (fi, fo) in zip(keys, sizes):
        w, b = init_linear(k, fi, fo)
        params += [w, b]
    return params


def pack_params(params):
    """Pack parameters into a bf16 weight slab + small f32 bias/VPU slab.

    Every matmul weight is zero-padded to a full (128, 128) tile so in-kernel
    activations can stay at lane width 128 exactly (zero lanes stay zero
    through matmul, bias add, ReLU and the final lane reduce).
    """
    (sw1, sb1, sw2, sb2,
     aw1, ab1, aw2, ab2, aw3, ab3,
     qw1, qb1, qw2, qb2, qw3, qb3,
     qw4, qb4, qw5, qb5, qw6, qb6) = params

    # --- bf16 matmul-weight slab ------------------------------------------------
    w_entries = [
        ("sw2", sw2), ("aw2", aw2), ("aw3", aw3),
        # qw1 rows: 0:32 -> img, 32:40 -> spd_embed, 40:72 -> action_embed
        ("qw1a", qw1[:32]), ("qw1b", qw1[32:40]), ("qw1c", qw1[40:72]),
        ("qw2", qw2), ("qw3", qw3), ("qw4", qw4), ("qw5", qw5),
    ]
    w_blocks, w_off = [], {}
    for i, (name, w) in enumerate(w_entries):
        r, c = w.shape
        blk = jnp.zeros((128, 128), jnp.float32).at[:r, :c].set(w.astype(jnp.float32))
        w_blocks.append(blk.astype(jnp.bfloat16))
        w_off[name] = i * 128
    wslab = jnp.concatenate(w_blocks, axis=0)          # (1280, 128) bf16 ~320 KiB

    # --- f32 bias / VPU-weight slab: one zero-padded 128-lane row each ----------
    f_entries = [
        ("sw1", sw1), ("sb1", sb1), ("sb2", sb2),
        ("aw1_0", aw1[0:1]), ("aw1_1", aw1[1:2]),
        ("ab1", ab1), ("ab2", ab2), ("ab3", ab3),
        ("qb1", qb1), ("qb2", qb2), ("qb3", qb3), ("qb4", qb4), ("qb5", qb5),
        ("qw6t", qw6.T), ("qb6", qb6),
    ]
    f_blocks, f_row = [], {}
    for i, (name, v) in enumerate(f_entries):
        v = v.reshape(1, -1).astype(jnp.float32)
        row = jnp.zeros((1, 128), jnp.float32).at[:, :v.shape[1]].set(v)
        f_blocks.append(row)
        f_row[name] = i
    pad = (-len(f_blocks)) % 8
    if pad:
        f_blocks.append(jnp.zeros((pad, 128), jnp.float32))
    fslab = jnp.concatenate(f_blocks, axis=0)          # (16, 128) f32, 8 KiB
    return wslab, w_off, fslab, f_row


# -----------------------------------------------------------------------------
# Wrapper
# -----------------------------------------------------------------------------
def dueling_forward(obs_feat, action, wslab, w_off, fslab, f_row, *, batch_block=512):
    B = obs_feat.shape[0]
    # One wrapper-side concat + lane pad -> a single lane-dense (B, 128) input.
    x = jnp.concatenate([obs_feat, action], axis=-1).astype(jnp.float32)   # (B, 35)
    kernel = partial(dueling_kernel, w_off=w_off, f_row=f_row)

    if B <= batch_block:
        # Whole batch resident in VMEM, grid=() — working set well under 1 MiB.
        x = jnp.pad(x, ((0, 0), (0, 128 - x.shape[1])))
        vmem = pl.BlockSpec(memory_space=pltpu.MemorySpace.VMEM)
        out = pl.pallas_call(
            kernel,
            out_shape=jax.ShapeDtypeStruct((B, 1), jnp.float32),
            in_specs=[vmem, vmem, vmem],
            out_specs=vmem,
        )(x, wslab, fslab)
        return out.reshape(-1)

    # Large batch: tile the batch axis; parallel so v7x's 2 TensorCores split it.
    Bp = ((B + batch_block - 1) // batch_block) * batch_block
    x = jnp.pad(x, ((0, Bp - B), (0, 128 - x.shape[1])))
    out = pl.pallas_call(
        kernel,
        out_shape=jax.ShapeDtypeStruct((Bp, 1), jnp.float32),
        grid=(Bp // batch_block,),
        in_specs=[
            pl.BlockSpec((batch_block, 128), lambda i: (i, 0)),
            pl.BlockSpec(wslab.shape, lambda i: (0, 0)),   # params stay resident
            pl.BlockSpec(fslab.shape, lambda i: (0, 0)),
        ],
        out_specs=pl.BlockSpec((batch_block, 1), lambda i: (i, 0)),
        compiler_params=pltpu.CompilerParams(dimension_semantics=("parallel",)),
    )(x, wslab, fslab)
    return out[:B].reshape(-1)


# -----------------------------------------------------------------------------
# Pure-JAX reference (mirrors the PyTorch module, full f32)
# -----------------------------------------------------------------------------
def dueling_forward_ref(obs_feat, action, params):
    def lin(x, w, b):
        return jnp.dot(x, w, precision=jax.lax.Precision.HIGHEST) + b

    p = params
    img = obs_feat[:, :32]
    speed = obs_feat[:, 32:33]
    spd = lin(jnp.maximum(lin(speed, p[0], p[1]), 0.0), p[2], p[3])
    a = jnp.maximum(lin(action, p[4], p[5]), 0.0)
    a = jnp.maximum(lin(a, p[6], p[7]), 0.0)
    a = lin(a, p[8], p[9])
    h = jnp.concatenate([img, spd, a], axis=-1)
    for i in range(10, 20, 2):
        h = jnp.maximum(lin(h, p[i], p[i + 1]), 0.0)
    out = lin(h, p[20], p[21])
    return out.reshape(-1)


# -----------------------------------------------------------------------------
# Main
# -----------------------------------------------------------------------------
if __name__ == "__main__":
    key = jax.random.PRNGKey(0)
    k_obs, k_act, k_par = jax.random.split(key, 3)

    params = make_params(k_par)
    wslab, w_off, fslab, f_row = pack_params(params)

    # --- small batch: whole-resident grid=() path -----------------------------
    B = 8
    obs_feat = jax.random.normal(k_obs, (B, 33), jnp.float32)  # 32 img dims + speed
    action = jax.random.normal(k_act, (B, 2), jnp.float32)

    out = dueling_forward(obs_feat, action, wslab, w_off, fslab, f_row)
    out = jax.block_until_ready(out)
    ref = dueling_forward_ref(obs_feat, action, params)
    assert out.shape == (B,)
    # bf16 matmul weights -> loosened tolerance vs the full-f32 reference.
    assert jnp.allclose(out, ref, atol=3e-2, rtol=3e-2), "mismatch vs reference (small B)"

    # --- large batch: batch-tiled, megacore-parallel path ----------------------
    B2 = 1040
    k_obs2, k_act2 = jax.random.split(jax.random.PRNGKey(1))
    obs_feat2 = jax.random.normal(k_obs2, (B2, 33), jnp.float32)
    action2 = jax.random.normal(k_act2, (B2, 2), jnp.float32)

    out2 = dueling_forward(obs_feat2, action2, wslab, w_off, fslab, f_row)
    out2 = jax.block_until_ready(out2)
    ref2 = dueling_forward_ref(obs_feat2, action2, params)
    assert out2.shape == (B2,)
    assert jnp.allclose(out2, ref2, atol=3e-2, rtol=3e-2), "mismatch vs reference (large B)"

    print("KERNEL_OK")
</pallas_src>

<mosaic_0001>
module attributes {stable_mosaic.version = 11 : i64} {
  func.func @dueling_kernel(%arg0: memref<8x128xf32, #tpu.memory_space<vmem>>, %arg1: memref<1280x128xbf16, #tpu.memory_space<vmem>>, %arg2: memref<16x128xf32, #tpu.memory_space<vmem>>, %arg3: memref<8x1xf32, #tpu.memory_space<vmem>>) attributes {dimension_semantics = [], scalar_prefetch = 0 : i64, scratch_operands = 0 : i64, tpu.core_type = #tpu.core_type<tc>} {
    %c0 = arith.constant 0 : index
    %c0_0 = arith.constant 0 : index
    %0 = vector.load %arg0[%c0, %c0_0] : memref<8x128xf32, #tpu.memory_space<vmem>>, vector<8x128xf32>
    %1 = vector.extract_strided_slice %0 {offsets = [0, 32], sizes = [8, 1], strides = [1, 1]} : vector<8x128xf32> to vector<8x1xf32>
    %2 = vector.extract_strided_slice %0 {offsets = [0, 33], sizes = [8, 1], strides = [1, 1]} : vector<8x128xf32> to vector<8x1xf32>
    %3 = vector.extract_strided_slice %0 {offsets = [0, 34], sizes = [8, 1], strides = [1, 1]} : vector<8x128xf32> to vector<8x1xf32>
    %c0_1 = arith.constant 0 : index
    %c0_2 = arith.constant 0 : index
    %4 = vector.load %arg2[%c0_1, %c0_2] : memref<16x128xf32, #tpu.memory_space<vmem>>, vector<1x128xf32>
    %5 = vector.broadcast %1 : vector<8x1xf32> to vector<8x128xf32>
    %6 = vector.broadcast %4 : vector<1x128xf32> to vector<8x128xf32>
    %7 = arith.mulf %5, %6 : vector<8x128xf32>
    %c1 = arith.constant 1 : index
    %c0_3 = arith.constant 0 : index
    %8 = vector.load %arg2[%c1, %c0_3] : memref<16x128xf32, #tpu.memory_space<vmem>>, vector<1x128xf32>
    %9 = vector.broadcast %8 : vector<1x128xf32> to vector<8x128xf32>
    %10 = arith.addf %7, %9 : vector<8x128xf32>
    %cst = arith.constant 0.000000e+00 : f32
    %11 = vector.broadcast %cst : f32 to vector<8x128xf32>
    %12 = arith.maximumf %10, %11 : vector<8x128xf32>
    %13 = arith.truncf %12 : vector<8x128xf32> to vector<8x128xbf16>
    %c0_4 = arith.constant 0 : index
    %c0_5 = arith.constant 0 : index
    %14 = vector.load %arg1[%c0_4, %c0_5] : memref<1280x128xbf16, #tpu.memory_space<vmem>>, vector<128x128xbf16>
    %cst_6 = arith.constant dense<0.000000e+00> : vector<8x128xf32>
    %15 = tpu.matmul %13, %14, %cst_6 {dimension_numbers = #tpu.dot_dimension_numbers<[1], [0], [0], [1], [0, 0, 1, 1], [], []>} : vector<8x128xbf16>, vector<128x128xbf16>, vector<8x128xf32> -> vector<8x128xf32>
    %c2 = arith.constant 2 : index
    %c0_7 = arith.constant 0 : index
    %16 = vector.load %arg2[%c2, %c0_7] : memref<16x128xf32, #tpu.memory_space<vmem>>, vector<1x128xf32>
    %17 = vector.broadcast %16 : vector<1x128xf32> to vector<8x128xf32>
    %18 = arith.addf %15, %17 : vector<8x128xf32>
    %c3 = arith.constant 3 : index
    %c0_8 = arith.constant 0 : index
    %19 = vector.load %arg2[%c3, %c0_8] : memref<16x128xf32, #tpu.memory_space<vmem>>, vector<1x128xf32>
    %20 = vector.broadcast %2 : vector<8x1xf32> to vector<8x128xf32>
    %21 = vector.broadcast %19 : vector<1x128xf32> to vector<8x128xf32>
    %22 = arith.mulf %20, %21 : vector<8x128xf32>
    %c4 = arith.constant 4 : index
    %c0_9 = arith.constant 0 : index
    %23 = vector.load %arg2[%c4, %c0_9] : memref<16x128xf32, #tpu.memory_space<vmem>>, vector<1x128xf32>
    %24 = vector.broadcast %3 : vector<8x1xf32> to vector<8x128xf32>
    %25 = vector.broadcast %23 : vector<1x128xf32> to vector<8x128xf32>
    %26 = arith.mulf %24, %25 : vector<8x128xf32>
    %27 = arith.addf %22, %26 : vector<8x128xf32>
    %c5 = arith.constant 5 : index
    %c0_10 = arith.constant 0 : index
    %28 = vector.load %arg2[%c5, %c0_10] : memref<16x128xf32, #tpu.memory_space<vmem>>, vector<1x128xf32>
    %29 = vector.broadcast %28 : vector<1x128xf32> to vector<8x128xf32>
    %30 = arith.addf %27, %29 : vector<8x128xf32>
    %cst_11 = arith.constant 0.000000e+00 : f32
    %31 = vector.broadcast %cst_11 : f32 to vector<8x128xf32>
    %32 = arith.maximumf %30, %31 : vector<8x128xf32>
    %33 = arith.truncf %32 : vector<8x128xf32> to vector<8x128xbf16>
    %c128 = arith.constant 128 : index
    %c0_12 = arith.constant 0 : index
    %34 = vector.load %arg1[%c128, %c0_12] : memref<1280x128xbf16, #tpu.memory_space<vmem>>, vector<128x128xbf16>
    %cst_13 = arith.constant dense<0.000000e+00> : vector<8x128xf32>
    %35 = tpu.matmul %33, %34, %cst_13 {dimension_numbers = #tpu.dot_dimension_numbers<[1], [0], [0], [1], [0, 0, 1, 1], [], []>} : vector<8x128xbf16>, vector<128x128xbf16>, vector<8x128xf32> -> vector<8x128xf32>
    %c6 = arith.constant 6 : index
    %c0_14 = arith.constant 0 : index
    %36 = vector.load %arg2[%c6, %c0_14] : memref<16x128xf32, #tpu.memory_space<vmem>>, vector<1x128xf32>
    %37 = vector.broadcast %36 : vector<1x128xf32> to vector<8x128xf32>
    %38 = arith.addf %35, %37 : vector<8x128xf32>
    %cst_15 = arith.constant 0.000000e+00 : f32
    %39 = vector.broadcast %cst_15 : f32 to vector<8x128xf32>
    %40 = arith.maximumf %38, %39 : vector<8x128xf32>
    %41 = arith.truncf %40 : vector<8x128xf32> to vector<8x128xbf16>
    %c256 = arith.constant 256 : index
    %c0_16 = arith.constant 0 : index
    %42 = vector.load %arg1[%c256, %c0_16] : memref<1280x128xbf16, #tpu.memory_space<vmem>>, vector<128x128xbf16>
    %cst_17 = arith.constant dense<0.000000e+00> : vector<8x128xf32>
    %43 = tpu.matmul %41, %42, %cst_17 {dimension_numbers = #tpu.dot_dimension_numbers<[1], [0], [0], [1], [0, 0, 1, 1], [], []>} : vector<8x128xbf16>, vector<128x128xbf16>, vector<8x128xf32> -> vector<8x128xf32>
    %c7 = arith.constant 7 : index
    %c0_18 = arith.constant 0 : index
    %44 = vector.load %arg2[%c7, %c0_18] : memref<16x128xf32, #tpu.memory_space<vmem>>, vector<1x128xf32>
    %45 = vector.broadcast %44 : vector<1x128xf32> to vector<8x128xf32>
    %46 = arith.addf %43, %45 : vector<8x128xf32>
    %47 = arith.truncf %0 : vector<8x128xf32> to vector<8x128xbf16>
    %c384 = arith.constant 384 : index
    %c0_19 = arith.constant 0 : index
    %48 = vector.load %arg1[%c384, %c0_19] : memref<1280x128xbf16, #tpu.memory_space<vmem>>, vector<128x128xbf16>
    %cst_20 = arith.constant dense<0.000000e+00> : vector<8x128xf32>
    %49 = tpu.matmul %47, %48, %cst_20 {dimension_numbers = #tpu.dot_dimension_numbers<[1], [0], [0], [1], [0, 0, 1, 1], [], []>} : vector<8x128xbf16>, vector<128x128xbf16>, vector<8x128xf32> -> vector<8x128xf32>
    %50 = arith.truncf %18 : vector<8x128xf32> to vector<8x128xbf16>
    %c512 = arith.constant 512 : index
    %c0_21 = arith.constant 0 : index
    %51 = vector.load %arg1[%c512, %c0_21] : memref<1280x128xbf16, #tpu.memory_space<vmem>>, vector<128x128xbf16>
    %cst_22 = arith.constant dense<0.000000e+00> : vector<8x128xf32>
    %52 = tpu.matmul %50, %51, %cst_22 {dimension_numbers = #tpu.dot_dimension_numbers<[1], [0], [0], [1], [0, 0, 1, 1], [], []>} : vector<8x128xbf16>, vector<128x128xbf16>, vector<8x128xf32> -> vector<8x128xf32>
    %53 = arith.addf %49, %52 : vector<8x128xf32>
    %54 = arith.truncf %46 : vector<8x128xf32> to vector<8x128xbf16>
    %c640 = arith.constant 640 : index
    %c0_23 = arith.constant 0 : index
    %55 = vector.load %arg1[%c640, %c0_23] : memref<1280x128xbf16, #tpu.memory_space<vmem>>, vector<128x128xbf16>
    %cst_24 = arith.constant dense<0.000000e+00> : vector<8x128xf32>
    %56 = tpu.matmul %54, %55, %cst_24 {dimension_numbers = #tpu.dot_dimension_numbers<[1], [0], [0], [1], [0, 0, 1, 1], [], []>} : vector<8x128xbf16>, vector<128x128xbf16>, vector<8x128xf32> -> vector<8x128xf32>
    %57 = arith.addf %53, %56 : vector<8x128xf32>
    %c8 = arith.constant 8 : index
    %c0_25 = arith.constant 0 : index
    %58 = vector.load %arg2[%c8, %c0_25] : memref<16x128xf32, #tpu.memory_space<vmem>>, vector<1x128xf32>
    %59 = vector.broadcast %58 : vector<1x128xf32> to vector<8x128xf32>
    %60 = arith.addf %57, %59 : vector<8x128xf32>
    %cst_26 = arith.constant 0.000000e+00 : f32
    %61 = vector.broadcast %cst_26 : f32 to vector<8x128xf32>
    %62 = arith.maximumf %60, %61 : vector<8x128xf32>
    %63 = arith.truncf %62 : vector<8x128xf32> to vector<8x128xbf16>
    %c768 = arith.constant 768 : index
    %c0_27 = arith.constant 0 : index
    %64 = vector.load %arg1[%c768, %c0_27] : memref<1280x128xbf16, #tpu.memory_space<vmem>>, vector<128x128xbf16>
    %cst_28 = arith.constant dense<0.000000e+00> : vector<8x128xf32>
    %65 = tpu.matmul %63, %64, %cst_28 {dimension_numbers = #tpu.dot_dimension_numbers<[1], [0], [0], [1], [0, 0, 1, 1], [], []>} : vector<8x128xbf16>, vector<128x128xbf16>, vector<8x128xf32> -> vector<8x128xf32>
    %c9 = arith.constant 9 : index
    %c0_29 = arith.constant 0 : index
    %66 = vector.load %arg2[%c9, %c0_29] : memref<16x128xf32, #tpu.memory_space<vmem>>, vector<1x128xf32>
    %67 = vector.broadcast %66 : vector<1x128xf32> to vector<8x128xf32>
    %68 = arith.addf %65, %67 : vector<8x128xf32>
    %cst_30 = arith.constant 0.000000e+00 : f32
    %69 = vector.broadcast %cst_30 : f32 to vector<8x128xf32>
    %70 = arith.maximumf %68, %69 : vector<8x128xf32>
    %71 = arith.truncf %70 : vector<8x128xf32> to vector<8x128xbf16>
    %c896 = arith.constant 896 : index
    %c0_31 = arith.constant 0 : index
    %72 = vector.load %arg1[%c896, %c0_31] : memref<1280x128xbf16, #tpu.memory_space<vmem>>, vector<128x128xbf16>
    %cst_32 = arith.constant dense<0.000000e+00> : vector<8x128xf32>
    %73 = tpu.matmul %71, %72, %cst_32 {dimension_numbers = #tpu.dot_dimension_numbers<[1], [0], [0], [1], [0, 0, 1, 1], [], []>} : vector<8x128xbf16>, vector<128x128xbf16>, vector<8x128xf32> -> vector<8x128xf32>
    %c10 = arith.constant 10 : index
    %c0_33 = arith.constant 0 : index
    %74 = vector.load %arg2[%c10, %c0_33] : memref<16x128xf32, #tpu.memory_space<vmem>>, vector<1x128xf32>
    %75 = vector.broadcast %74 : vector<1x128xf32> to vector<8x128xf32>
    %76 = arith.addf %73, %75 : vector<8x128xf32>
    %cst_34 = arith.constant 0.000000e+00 : f32
    %77 = vector.broadcast %cst_34 : f32 to vector<8x128xf32>
    %78 = arith.maximumf %76, %77 : vector<8x128xf32>
    %79 = arith.truncf %78 : vector<8x128xf32> to vector<8x128xbf16>
    %c1024 = arith.constant 1024 : index
    %c0_35 = arith.constant 0 : index
    %80 = vector.load %arg1[%c1024, %c0_35] : memref<1280x128xbf16, #tpu.memory_space<vmem>>, vector<128x128xbf16>
    %cst_36 = arith.constant dense<0.000000e+00> : vector<8x128xf32>
    %81 = tpu.matmul %79, %80, %cst_36 {dimension_numbers = #tpu.dot_dimension_numbers<[1], [0], [0], [1], [0, 0, 1, 1], [], []>} : vector<8x128xbf16>, vector<128x128xbf16>, vector<8x128xf32> -> vector<8x128xf32>
    %c11 = arith.constant 11 : index
    %c0_37 = arith.constant 0 : index
    %82 = vector.load %arg2[%c11, %c0_37] : memref<16x128xf32, #tpu.memory_space<vmem>>, vector<1x128xf32>
    %83 = vector.broadcast %82 : vector<1x128xf32> to vector<8x128xf32>
    %84 = arith.addf %81, %83 : vector<8x128xf32>
    %cst_38 = arith.constant 0.000000e+00 : f32
    %85 = vector.broadcast %cst_38 : f32 to vector<8x128xf32>
    %86 = arith.maximumf %84, %85 : vector<8x128xf32>
    %87 = arith.truncf %86 : vector<8x128xf32> to vector<8x128xbf16>
    %c1152 = arith.constant 1152 : index
    %c0_39 = arith.constant 0 : index
    %88 = vector.load %arg1[%c1152, %c0_39] : memref<1280x128xbf16, #tpu.memory_space<vmem>>, vector<128x128xbf16>
    %cst_40 = arith.constant dense<0.000000e+00> : vector<8x128xf32>
    %89 = tpu.matmul %87, %88, %cst_40 {dimension_numbers = #tpu.dot_dimension_numbers<[1], [0], [0], [1], [0, 0, 1, 1], [], []>} : vector<8x128xbf16>, vector<128x128xbf16>, vector<8x128xf32> -> vector<8x128xf32>
    %c12 = arith.constant 12 : index
    %c0_41 = arith.constant 0 : index
    %90 = vector.load %arg2[%c12, %c0_41] : memref<16x128xf32, #tpu.memory_space<vmem>>, vector<1x128xf32>
    %91 = vector.broadcast %90 : vector<1x128xf32> to vector<8x128xf32>
    %92 = arith.addf %89, %91 : vector<8x128xf32>
    %cst_42 = arith.constant 0.000000e+00 : f32
    %93 = vector.broadcast %cst_42 : f32 to vector<8x128xf32>
    %94 = arith.maximumf %92, %93 : vector<8x128xf32>
    %c13 = arith.constant 13 : index
    %c0_43 = arith.constant 0 : index
    %95 = vector.load %arg2[%c13, %c0_43] : memref<16x128xf32, #tpu.memory_space<vmem>>, vector<1x128xf32>
    %96 = vector.broadcast %95 : vector<1x128xf32> to vector<8x128xf32>
    %97 = arith.mulf %94, %96 : vector<8x128xf32>
    %cst_44 = arith.constant dense<0.000000e+00> : vector<8xf32>
    %98 = vector.multi_reduction <add>, %97, %cst_44 [1] : vector<8x128xf32> to vector<8xf32>
    %99 = vector.shape_cast %98 : vector<8xf32> to vector<8x1xf32>
    %c14 = arith.constant 14 : index
    %c0_45 = arith.constant 0 : index
    %100 = vector.load %arg2[%c14, %c0_45] : memref<16x128xf32, #tpu.memory_space<vmem>>, vector<1x128xf32>
    %101 = vector.extract_strided_slice %100 {offsets = [0, 0], sizes = [1, 1], strides = [1, 1]} : vector<1x128xf32> to vector<1x1xf32>
    %102 = vector.broadcast %101 : vector<1x1xf32> to vector<8x1xf32>
    %103 = arith.addf %99, %102 : vector<8x1xf32>
    %c0_46 = arith.constant 0 : index
    %c0_47 = arith.constant 0 : index
    %104 = vector.load %arg3[%c0_46, %c0_47] : memref<8x1xf32, #tpu.memory_space<vmem>>, vector<8x1xf32>
    tpu.vector_store %arg3[%c0_46, %c0_47], %103 {strides = array<i32>} : memref<8x1xf32, #tpu.memory_space<vmem>>, vector<8x1xf32>,
    return
  }
}

</mosaic_0001>

<bundles_post_ra>
// kernel: tpu_custom_call.1
= control target key start
LH: loop header
LB: loop body
LE: loop exit
PB: predicated region body
PF: predicated region fallthrough
CT: control target
= control target key end

     0   :  { %8 = vsyncpa [#allocation3], 0  ;;  %s1949_s0 = inlined_call_operand.hbm [shape: f32[8,128], index: 0, kind: input, shape index: {}]   ;;  %s1950_s1 = inlined_call_operand.hbm [shape: bf16[1280,128], index: 1, kind: input, shape index: {}]   ;;  %s1951_s2 = inlined_call_operand.hbm [shape: f32[16,128], index: 2, kind: input, shape index: {}]   ;;  %s1952_s3 = inlined_call_operand.vmem [shape: f32[8,1], index: 3, kind: output, shape index: {}]  }
   0x1   :  { %9 = vsyncpa [#allocation5], 0  ;;  %s1771_s12 = smov [#allocation4]   ;;  %s1701_s16 = scalar_lea.hbm %s1950_s1, 10240 }
   0x2   :  { %s25_s13 = sshll.u32 %s1771_s12, 4  ;;  %p1702_p0 = scmp.ne.s32.totalorder %s1950_s1, %s1701_s16  ;;  %s26_s13 = int_to_ptr.vmem [resolvable:$true] %s25_s13 }
   0x3   :  { %p1705_p1 = scmp.lt.u32.totalorder %s1701_s16, %s1950_s1 }
   0x5   :  { %p1707_p2 = pnand %p1705_p1, %p1702_p0 }
   0x7   :  { %1710 = shalt.err (!%p1707_p2)
}
   0x8   :  { %s1711_s21 = scalar_lea.vmem %s26_s13, 10240  ;;  %p1716_p4 = scmp.lt.s32.totalorder %s26_s13, %s26_s13 }
   0x9   :  { %p1712_p3 = scmp.ne.s32.totalorder %s26_s13, %s1711_s21  ;;  %p1717_p5 = scmp.lt.s32.totalorder %s1711_s21, %s1711_s21 }
   0xb   :  { %p1718_p6 = por %p1717_p5, %p1716_p4 }
   0xd   :  { %p1719_p7 = pnand %p1718_p6, %p1712_p3 }
   0xf   :  { %1722 = shalt.err (!%p1719_p7)
}
  0x10   :  { %s1772_s22 = smov 64   ;;  %s1773_s23 = smov 4  }
  0x11   :  { %31 = dma.hbm_to_vmem [thread:$0]  %s1950_s1, 10240, %s26_s13, [#allocation5], %s1772_s22, %s1772_s22, %s1773_s23  }
  0x12   :  { %s1774_s26 = smov [#allocation2]   ;;  %s1775_s28 = smov [#allocation6]  }
  0x13   :  { %s16_s27 = sshll.u32 %s1774_s26, 4  ;;  %s37_s29 = sshll.u32 %s1775_s28, 4  ;;  %s17_s27 = int_to_ptr.vmem [resolvable:$true] %s16_s27  ;;  %s38_s29 = int_to_ptr.vmem [resolvable:$true] %s37_s29 }
  0x14   :  { %s1723_s5 = scalar_lea.hbm %s1949_s0, 128 }
  0x15   :  { %p1724_p8 = scmp.ne.s32.totalorder %s1949_s0, %s1723_s5  ;;  %p1727_p9 = scmp.lt.u32.totalorder %s1723_s5, %s1949_s0 }
  0x17   :  { %p1729_p10 = pnand %p1727_p9, %p1724_p8 }
  0x19   :  { %1732 = shalt.err (!%p1729_p10)
}
  0x1a   :  { %s1733_s1 = scalar_lea.vmem %s17_s27, 128  ;;  %p1738_p12 = scmp.lt.s32.totalorder %s17_s27, %s17_s27 }
  0x1b   :  { %p1734_p11 = scmp.ne.s32.totalorder %s17_s27, %s1733_s1  ;;  %p1739_p13 = scmp.lt.s32.totalorder %s1733_s1, %s1733_s1 }
  0x1d   :  { %p1740_p0 = por %p1739_p13, %p1738_p12 }
  0x1f   :  { %p1741_p1 = pnand %p1740_p0, %p1734_p11 }
  0x21   :  { %1744 = shalt.err (!%p1741_p1)
}
  0x22   :  { %19 = dma.hbm_to_vmem [thread:$0]  %s1949_s0, 128, %s17_s27, [#allocation3]  }
  0x23   :  { %s1745_s14 = scalar_lea.hbm %s1951_s2, 256 }
  0x24   :  { %p1746_p2 = scmp.ne.s32.totalorder %s1951_s2, %s1745_s14  ;;  %p1749_p3 = scmp.lt.u32.totalorder %s1745_s14, %s1951_s2 }
  0x26   :  { %p1751_p4 = pnand %p1749_p3, %p1746_p2 }
  0x28   :  { %1754 = shalt.err (!%p1751_p4)
}
  0x29   :  { %s1755_s19 = scalar_lea.vmem %s38_s29, 256  ;;  %p1760_p6 = scmp.lt.s32.totalorder %s38_s29, %s38_s29 }
  0x2a   :  { %p1756_p5 = scmp.ne.s32.totalorder %s38_s29, %s1755_s19  ;;  %p1761_p7 = scmp.lt.s32.totalorder %s1755_s19, %s1755_s19 }
  0x2c   :  { %p1762_p8 = por %p1761_p7, %p1760_p6 }
  0x2e   :  { %p1763_p9 = pnand %p1762_p8, %p1756_p5 }
  0x30   :  { %1766 = shalt.err (!%p1763_p9)
}
  0x31   :  { %s1776_s0 = smov 128   ;;  %s1777_s20 = smov 8  }
  0x32   :  { %43 = dma.hbm_to_vmem [thread:$0]  %s1951_s2, 256, %s38_s29, [#allocation5], %s1776_s0, %s1776_s0, %s1777_s20  }
  0x33   :  { %1767 = dma.done.wait [#allocation3], 128  }
  0x34   :  { %1768 = vsyncadd [#allocation3], 4294967168 }
  0x35   :  { %1769 = dma.done.wait [#allocation5], 10496  }
  0x36   :  { %1770 = vsyncadd [#allocation5], 4294956800  ;;  %v1778_v0 = vmov 33   ;;  %v1779_v1 = vmov 0.0   ;;  %v1841_v2 = vld [vmem:[#allocation2] sm:$0xff]  ;;  %v1621_v3 = vld [vmem:[#allocation4 + $0x40] sm:$0xff]  }
  0x37   :  { %1618 = vset.pattern.permute.xlu0 %v1778_v0  ;;  %1426 = vmatprep.subr.bf16.mxu1 %v1779_v1  ;;  %v1622_v4 = vld [vmem:[#allocation4 + $0x48] sm:$0xff]   ;;  %v1780_v5 = vmov 34   ;;  %v1623_v6 = vld [vmem:[#allocation4 + $0x50] sm:$0xff]   ;;  %v1624_v7 = vld [vmem:[#allocation4 + $0x58] sm:$0xff]   ;;  %vm1781_vm0 = vmmov 0   ;;  %v1782_v10 = vmov 32  }
  0x38   :  { %1406 = vmatprep.subr.bf16.mxu0 %v1779_v1  ;;  %185 = vperm.xlu0 %1618, %v1841_v2   ;;  %v1625_v8 = vld [vmem:[#allocation4 + $0x60] sm:$0xff]   ;;  %v1626_v11 = vld [vmem:[#allocation4 + $0x68] sm:$0xff]   ;;  %v1631_v13 = vld [vmem:[#allocation4 + $0x10] sm:$0xff]   ;;  %vm1213_vm1 = vcmask 7168  }
  0x39   :  { %1427 = vmatpush3.bf16.msra.mxu1 %v1621_v3  ;;  %1442 = vmatprep.mubr.msk.bf16.mxu1 %vm1781_vm0, %v1779_v1  ;;  %v1629_v9 = vld [vmem:[#allocation4] sm:$0xff]   ;;  %v1630_v12 = vld [vmem:[#allocation4 + $0x8] sm:$0xff]   ;;  %v1627_v14 = vld [vmem:[#allocation4 + $0x70] sm:$0xff]  }
  0x3a   :  { %1428 = vmatprep.subr.bf16.mxu1 %v1779_v1  ;;  %1422 = vmatprep.mubr.msk.bf16.mxu0 %vm1781_vm0, %v1779_v1  ;;  %v1628_v15 = vld [vmem:[#allocation4 + $0x78] sm:$0xff]   ;;  %v1633_v17 = vld [vmem:[#allocation4 + $0x20] sm:$0xff]   ;;  %v1634_v18 = vld [vmem:[#allocation4 + $0x28] sm:$0xff]  }
  0x3b   :  { %1620 = vset.pattern.permute.xlu1 %v1782_v10  ;;  %1407 = vmatpush3.bf16.msra.mxu0 %v1629_v9  ;;  %v1632_v16 = vld [vmem:[#allocation4 + $0x18] sm:$0xff]   ;;  %v1635_v19 = vld [vmem:[#allocation4 + $0x30] sm:$0xff]   ;;  %v1232_v22 = vld [vmem:[#allocation6 + $0x3] ss:$0 sm:$0xff] }
  0x3c   :  { %1619 = vset.pattern.permute.xlu0 %v1780_v5  ;;  %58 = vperm.xlu1 %1620, %v1841_v2   ;;  %v1636_v20 = vld [vmem:[#allocation4 + $0x38] sm:$0xff]   ;;  %v1233_v23 = vld [vmem:[#allocation6 + $0x4] ss:$0 sm:$0xff]  ;;  %v1234_v27 = vld [vmem:[#allocation6 + $0x5] ss:$0 sm:$0xff] }
  0x3d   :  { %195 = vperm.xlu0 %1619, %v1841_v2   ;;  %1429 = vmatpush3.bf16.msra.mxu1 %v1622_v4  ;;  %v1221_v32 = vld [vmem:[#allocation6] ss:$0 sm:$0xff]  ;;  %v1222_v33 = vld [vmem:[#allocation6 + $0x1] ss:$0 sm:$0xff]  ;;  %v1638_v40 = vld [vmem:[#allocation4 + $0x88] sm:$0xff]  }
  0x3e   :  { %1430 = vmatprep.subr.bf16.mxu1 %v1779_v1  ;;  %1408 = vmatprep.subr.bf16.mxu0 %v1779_v1  ;;  %v1637_v38 = vld [vmem:[#allocation4 + $0x80] sm:$0xff]   ;;  %v1639_v41 = vld [vmem:[#allocation4 + $0x90] sm:$0xff]   ;;  %v1640_v42 = vld [vmem:[#allocation4 + $0x98] sm:$0xff]  }
  0x3f   :  { %1409 = vmatpush3.bf16.msra.mxu0 %v1630_v12  ;;  %v1641_v43 = vld [vmem:[#allocation4 + $0xa0] sm:$0xff]   ;;  %v1642_v44 = vld [vmem:[#allocation4 + $0xa8] sm:$0xff]   ;;  %v1643_v45 = vld [vmem:[#allocation4 + $0xb0] sm:$0xff]  }
  0x40   :  { %1410 = vmatprep.subr.bf16.mxu0 %v1779_v1  ;;  %v1644_v46 = vld [vmem:[#allocation4 + $0xb8] sm:$0xff]   ;;  %v1645_v47 = vld [vmem:[#allocation4 + $0x100] sm:$0xff]   ;;  %v1647_v48 = vld [vmem:[#allocation4 + $0x108] sm:$0xff]  }
  0x41   :  { %1431 = vmatpush3.bf16.msra.mxu1 %v1623_v6  ;;  %v1649_v49 = vld [vmem:[#allocation4 + $0x110] sm:$0xff]   ;;  %v1651_v50 = vld [vmem:[#allocation4 + $0x118] sm:$0xff]   ;;  %v1653_v51 = vld [vmem:[#allocation4 + $0x120] sm:$0xff]  }
  0x42   :  { %1432 = vmatprep.subr.bf16.mxu1 %v1779_v1  ;;  %v1655_v52 = vld [vmem:[#allocation4 + $0x128] sm:$0xff]   ;;  %v1657_v53 = vld [vmem:[#allocation4 + $0x130] sm:$0xff]   ;;  %v1659_v54 = vld [vmem:[#allocation4 + $0x138] sm:$0xff]  }
  0x43   :  { %1411 = vmatpush3.bf16.msra.mxu0 %v1631_v13  ;;  %v1235_v55 = vld [vmem:[#allocation6 + $0x6] ss:$0 sm:$0xff]  ;;  %v1648_v0 = vld [vmem:[#allocation4 + $0xc8] sm:$0xff]   ;;  %v1223_v3 = vld [vmem:[#allocation6 + $0x2] ss:$0 sm:$0xff] }
  0x44   :  { %1412 = vmatprep.subr.bf16.mxu0 %v1779_v1  ;;  %v1646_v62 = vld [vmem:[#allocation4 + $0xc0] sm:$0xff]   ;;  %v1652_v12 = vld [vmem:[#allocation4 + $0xd8] sm:$0xff]   ;;  %v1662_v13 = vld [vmem:[#allocation4 + $0x148] sm:$0xff]  }
  0x45   :  { %1433 = vmatpush3.bf16.msra.mxu1 %v1624_v7  ;;  %v1650_v7 = vld [vmem:[#allocation4 + $0xd0] sm:$0xff]   ;;  %v1661_v9 = vld [vmem:[#allocation4 + $0x140] sm:$0xff]  }
  0x46   :  { %1434 = vmatprep.subr.bf16.mxu1 %v1779_v1 }
  0x47   :  { %1413 = vmatpush3.bf16.msra.mxu0 %v1632_v16  ;;  %v1656_v16 = vld [vmem:[#allocation4 + $0xe8] sm:$0xff]  }
  0x48   :  { %1414 = vmatprep.subr.bf16.mxu0 %v1779_v1 }
  0x49   :  { %1435 = vmatpush3.bf16.msra.mxu1 %v1625_v8 }
  0x4a   :  { %1436 = vmatprep.subr.bf16.mxu1 %v1779_v1 }
  0x4b   :  { %1415 = vmatpush3.bf16.msra.mxu0 %v1633_v17  ;;  %v1664_v17 = vld [vmem:[#allocation4 + $0x158] sm:$0xff]  }
  0x4c   :  { %1416 = vmatprep.subr.bf16.mxu0 %v1779_v1 }
  0x4d   :  { %1437 = vmatpush3.bf16.msra.mxu1 %v1626_v11 }
  0x4e   :  { %1438 = vmatprep.subr.bf16.mxu1 %v1779_v1 }
  0x4f   :  { %1417 = vmatpush3.bf16.msra.mxu0 %v1634_v18  ;;  %v1658_v18 = vld [vmem:[#allocation4 + $0xf0] sm:$0xff]  }
  0x50   :  { %1418 = vmatprep.subr.bf16.mxu0 %v1779_v1 }
  0x51   :  { %1439 = vmatpush3.bf16.msra.mxu1 %v1627_v14  ;;  %v1654_v14 = vld [vmem:[#allocation4 + $0xe0] sm:$0xff]  }
  0x52   :  { %1440 = vmatprep.subr.bf16.mxu1 %v1779_v1 }
  0x53   :  { %1419 = vmatpush3.bf16.msra.mxu0 %v1635_v19  ;;  %v1665_v19 = vld [vmem:[#allocation4 + $0x160] sm:$0xff]  }
  0x54   :  { %1420 = vmatprep.subr.bf16.mxu0 %v1779_v1 }
  0x55   :  { %1441 = vmatpush3.bf16.msra.mxu1 %v1628_v15  ;;  %v1663_v15 = vld [vmem:[#allocation4 + $0x150] sm:$0xff]  }
  0x56   :  { %1466 = vmatprep.subr.bf16.mxu1 %v1779_v1 }
  0x57   :  { %1421 = vmatpush3.bf16.msra.mxu0 %v1636_v20  ;;  %v1660_v20 = vld [vmem:[#allocation4 + $0xf8] sm:$0xff]  }
  0x58   :  { %1446 = vmatprep.subr.bf16.mxu0 %v1779_v1 }
  0xb7   :  { %v186_v21 = vpop.permute.xlu0 %185 }
  0xb8   :  { %v192_v25 = vmul.f32 %v1232_v22, %v186_v21  ;;  %v1666_v21 = vld [vmem:[#allocation4 + $0x168] sm:$0xff]   ;;  %v432_v22 = vpack.c.bf16 %v1841_v2, %v1841_v2 }
  0xb9   :  { %v1670_v2 = vld [vmem:[#allocation4 + $0x188] sm:$0xff]  }
  0xbb   :  { %v59_v34 = vpop.permute.xlu1 %58 }
  0xbc   :  { %v196_v24 = vpop.permute.xlu0 %195  ;;  %v65_v35 = vmul.f32 %v1221_v32, %v59_v34 }
  0xbd   :  { %v202_v26 = vmul.f32 %v1233_v23, %v196_v24  ;;  %v1667_v23 = vld [vmem:[#allocation4 + $0x170] sm:$0xff]   ;;  %v1668_v24 = vld [vmem:[#allocation4 + $0x178] sm:$0xff]  }
  0xbe   :  { %v71_v36 = vadd.f32 %v1222_v33, %v65_v35 }
  0xbf   :  { %v203_v28 = vadd.f32 %v202_v26, %v192_v25  ;;  %v1669_v25 = vld [vmem:[#allocation4 + $0x180] sm:$0xff]   ;;  %v1671_v26 = vld [vmem:[#allocation4 + $0x190] sm:$0xff]  }
  0xc0   :  { %v72_v37 = vmax.f32 %v71_v36, 0.0 }
  0xc1   :  { %v209_v29 = vadd.f32 %v1234_v27, %v203_v28  ;;  %v1672_v27 = vld [vmem:[#allocation4 + $0x198] sm:$0xff]   ;;  %v1673_v28 = vld [vmem:[#allocation4 + $0x1a0] sm:$0xff]  }
  0xc2   :  { %v73_v39 = vpack.c.bf16 %v72_v37, %v72_v37 }
  0xc3   :  { %v210_v30 = vmax.f32 %v209_v29, 0.0  ;;  %v1674_v29 = vld [vmem:[#allocation4 + $0x1a8] sm:$0xff]  }
  0xc4   :  { %1423 = vmatmul.mubr.bf16.vlgmr.msra.gmra.mrb[0].mxu0 %v73_v39 }
  0xc5   :  { %v211_v31 = vpack.c.bf16 %v210_v30, %v210_v30  ;;  %1447 = vmatpush3.bf16.msra.mxu0 %v1637_v38  ;;  %1462 = vmatprep.mubr.msk.bf16.mxu0 %vm1781_vm0, %v1779_v1  ;;  %v1244_v30 = vld [vmem:[#allocation6 + $0x7] ss:$0 sm:$0xff] }
  0xc6   :  { %1448 = vmatprep.subr.bf16.mxu0 %v1779_v1 }
  0xc7   :  { %1443 = vmatmul.mubr.bf16.vlgmr.msra.gmra.mrb[0].mxu1 %v211_v31 }
  0xc8   :  { %1482 = vmatprep.mubr.msk.bf16.mxu1 %vm1781_vm0, %v1779_v1  ;;  %1467 = vmatpush3.bf16.msra.mxu1 %v1645_v47  ;;  %v1676_v47 = vld [vmem:[#allocation4 + $0x1b8] sm:$0xff]  }
  0xc9   :  { %1449 = vmatpush3.bf16.msra.mxu0 %v1638_v40  ;;  %1468 = vmatprep.subr.bf16.mxu1 %v1779_v1 }
  0xca   :  { %1450 = vmatprep.subr.bf16.mxu0 %v1779_v1 }
  0xcc   :  { %1469 = vmatpush3.bf16.msra.mxu1 %v1647_v48  ;;  %v1677_v48 = vld [vmem:[#allocation4 + $0x1c0] sm:$0xff]  }
  0xcd   :  { %1451 = vmatpush3.bf16.msra.mxu0 %v1639_v41  ;;  %1470 = vmatprep.subr.bf16.mxu1 %v1779_v1 }
  0xce   :  { %1452 = vmatprep.subr.bf16.mxu0 %v1779_v1 }
  0xd0   :  { %1471 = vmatpush3.bf16.msra.mxu1 %v1649_v49  ;;  %v1678_v49 = vld [vmem:[#allocation4 + $0x1c8] sm:$0xff]  }
  0xd1   :  { %1453 = vmatpush3.bf16.msra.mxu0 %v1640_v42  ;;  %1472 = vmatprep.subr.bf16.mxu1 %v1779_v1 }
  0xd2   :  { %1454 = vmatprep.subr.bf16.mxu0 %v1779_v1 }
  0xd4   :  { %1473 = vmatpush3.bf16.msra.mxu1 %v1651_v50  ;;  %v1679_v50 = vld [vmem:[#allocation4 + $0x1d0] sm:$0xff]  }
  0xd5   :  { %1455 = vmatpush3.bf16.msra.mxu0 %v1641_v43  ;;  %1474 = vmatprep.subr.bf16.mxu1 %v1779_v1 }
  0xd6   :  { %1456 = vmatprep.subr.bf16.mxu0 %v1779_v1 }
  0xd8   :  { %1475 = vmatpush3.bf16.msra.mxu1 %v1653_v51  ;;  %v1680_v51 = vld [vmem:[#allocation4 + $0x1d8] sm:$0xff]  }
  0xd9   :  { %1457 = vmatpush3.bf16.msra.mxu0 %v1642_v44  ;;  %1476 = vmatprep.subr.bf16.mxu1 %v1779_v1 }
  0xda   :  { %1458 = vmatprep.subr.bf16.mxu0 %v1779_v1 }
  0xdc   :  { %1477 = vmatpush3.bf16.msra.mxu1 %v1655_v52  ;;  %v1681_v52 = vld [vmem:[#allocation4 + $0x1e0] sm:$0xff]  }
  0xdd   :  { %1459 = vmatpush3.bf16.msra.mxu0 %v1643_v45  ;;  %1478 = vmatprep.subr.bf16.mxu1 %v1779_v1 }
  0xde   :  { %1460 = vmatprep.subr.bf16.mxu0 %v1779_v1 }
  0xe0   :  { %1479 = vmatpush3.bf16.msra.mxu1 %v1657_v53  ;;  %v1682_v53 = vld [vmem:[#allocation4 + $0x1e8] sm:$0xff]  }
  0xe1   :  { %1461 = vmatpush3.bf16.msra.mxu0 %v1644_v46  ;;  %1480 = vmatprep.subr.bf16.mxu1 %v1779_v1  ;;  %v1675_v46 = vld [vmem:[#allocation4 + $0x1b0] sm:$0xff]  }
  0xe2   :  { %1486 = vmatprep.subr.bf16.mxu0 %v1779_v1 }
  0xe4   :  { %1481 = vmatpush3.bf16.msra.mxu1 %v1659_v54 }
  0xe5   :  { %1506 = vmatprep.subr.bf16.mxu1 %v1779_v1 }
 0x197   :  { %v177_v4 = vpop.f32.mrb[0].mxu0 }
 0x198   :  { %v178_v5 = vadd.f32 %v1223_v3, %v177_v4  ;;  %v1424_v6 = vpop.f32.mrb[1].mxu0  ;;  %v1685_v3 = vld [vmem:[#allocation4 + $0x200] sm:$0xff]   ;;  %v1686_v4 = vld [vmem:[#allocation4 + $0x208] sm:$0xff]  }
 0x199   :  { %v180_v8 = vpop.f32.mrb[2].mxu0  ;;  %v1688_v6 = vld [vmem:[#allocation4 + $0x218] sm:$0xff]  }
 0x19a   :  { %v315_v56 = vpop.f32.mrb[0].mxu1  ;;  %v449_v10 = vpack.c.bf16 %v178_v5, %v178_v5  ;;  %v1425_v11 = vpop.f32.mrb[3].mxu0  ;;  %v1687_v5 = vld [vmem:[#allocation4 + $0x210] sm:$0xff]   ;;  %v1690_v8 = vld [vmem:[#allocation4 + $0x228] sm:$0xff]  }
 0x19b   :  { %v316_v57 = vadd.f32 %v1235_v55, %v315_v56  ;;  %v1444_v58 = vpop.f32.mrb[1].mxu1  ;;  %v1277_v55 = vld [vmem:[#allocation6 + $0x8] ss:$0 sm:$0xff] }
 0x19c   :  { %v318_v59 = vpop.f32.mrb[2].mxu1  ;;  %1483 = vmatmul.mubr.bf16.vlgmr.msra.gmra.mrb[4].mxu1 %v449_v10 }
 0x19d   :  { %v321_v60 = vmax.f32 %v316_v57, 0.0  ;;  %v1445_v61 = vpop.f32.mrb[3].mxu1  ;;  %1507 = vmatpush3.bf16.msra.mxu1 %v1661_v9  ;;  %1522 = vmatprep.mubr.msk.bf16.mxu1 %vm1781_vm0, %v1779_v1  ;;  %v1278_v9 = vld [vmem:[#allocation6 + $0x9] ss:$0 sm:$0xff] }
 0x19e   :  { %1508 = vmatprep.subr.bf16.mxu1 %v1779_v1 }
 0x19f   :  { %v322_v63 = vpack.c.bf16 %v321_v60, %v321_v60 }
 0x1a1   :  { %1463 = vmatmul.mubr.bf16.vlgmr.msra.gmra.mrb[4].mxu0 %v322_v63  ;;  %1509 = vmatpush3.bf16.msra.mxu1 %v1662_v13  ;;  %v1683_v63 = vld [vmem:[#allocation4 + $0x1f0] sm:$0xff]  }
 0x1a2   :  { %1487 = vmatpush3.bf16.msra.mxu0 %v1646_v62  ;;  %1502 = vmatprep.mubr.msk.bf16.mxu0 %vm1781_vm0, %v1779_v1 }
 0x1a3   :  { %1488 = vmatprep.subr.bf16.mxu0 %v1779_v1  ;;  %1510 = vmatprep.subr.bf16.mxu1 %v1779_v1 }
 0x1a5   :  { %1511 = vmatpush3.bf16.msra.mxu1 %v1663_v15 }
 0x1a6   :  { %1489 = vmatpush3.bf16.msra.mxu0 %v1648_v0  ;;  %1512 = vmatprep.subr.bf16.mxu1 %v1779_v1  ;;  %v1684_v0 = vld [vmem:[#allocation4 + $0x1f8] sm:$0xff]  }
 0x1a7   :  { %1490 = vmatprep.subr.bf16.mxu0 %v1779_v1 }
 0x1a9   :  { %1513 = vmatpush3.bf16.msra.mxu1 %v1664_v17  ;;  %v1691_v17 = vld [vmem:[#allocation4 + $0x230] sm:$0xff]  }
 0x1aa   :  { %1491 = vmatpush3.bf16.msra.mxu0 %v1650_v7  ;;  %1514 = vmatprep.subr.bf16.mxu1 %v1779_v1  ;;  %v1689_v7 = vld [vmem:[#allocation4 + $0x220] sm:$0xff]  }
 0x1ab   :  { %1492 = vmatprep.subr.bf16.mxu0 %v1779_v1 }
 0x1ad   :  { %1515 = vmatpush3.bf16.msra.mxu1 %v1665_v19  ;;  %v1693_v19 = vld [vmem:[#allocation4 + $0x240] sm:$0xff]  }
 0x1ae   :  { %1493 = vmatpush3.bf16.msra.mxu0 %v1652_v12  ;;  %1516 = vmatprep.subr.bf16.mxu1 %v1779_v1 }
 0x1af   :  { %1494 = vmatprep.subr.bf16.mxu0 %v1779_v1 }
 0x1b1   :  { %1517 = vmatpush3.bf16.msra.mxu1 %v1666_v21  ;;  %v1695_v21 = vld [vmem:[#allocation4 + $0x250] sm:$0xff]  }
 0x1b2   :  { %1495 = vmatpush3.bf16.msra.mxu0 %v1654_v14  ;;  %1518 = vmatprep.subr.bf16.mxu1 %v1779_v1 }
 0x1b3   :  { %1496 = vmatprep.subr.bf16.mxu0 %v1779_v1 }
 0x1b5   :  { %1519 = vmatpush3.bf16.msra.mxu1 %v1667_v23  ;;  %v1697_v23 = vld [vmem:[#allocation4 + $0x260] sm:$0xff]  }
 0x1b6   :  { %1497 = vmatpush3.bf16.msra.mxu0 %v1656_v16  ;;  %1520 = vmatprep.subr.bf16.mxu1 %v1779_v1 }
 0x1b7   :  { %1498 = vmatprep.subr.bf16.mxu0 %v1779_v1 }
 0x1b9   :  { %1521 = vmatpush3.bf16.msra.mxu1 %v1668_v24  ;;  %v1698_v24 = vld [vmem:[#allocation4 + $0x268] sm:$0xff]  }
 0x1ba   :  { %1499 = vmatpush3.bf16.msra.mxu0 %v1658_v18  ;;  %1546 = vmatprep.subr.bf16.mxu1 %v1779_v1  ;;  %v1692_v18 = vld [vmem:[#allocation4 + $0x238] sm:$0xff]  }
 0x1bb   :  { %1500 = vmatprep.subr.bf16.mxu0 %v1779_v1 }
 0x1be   :  { %1501 = vmatpush3.bf16.msra.mxu0 %v1660_v20  ;;  %v1694_v20 = vld [vmem:[#allocation4 + $0x248] sm:$0xff]  }
 0x1bf   :  { %1526 = vmatprep.subr.bf16.mxu0 %v1779_v1 }
 0x1c1   :  { %1503 = vmatmul.mubr.bf16.vlgmr.msra.gmra.mrb[8].mxu0 %v432_v22  ;;  %v1696_v22 = vld [vmem:[#allocation4 + $0x258] sm:$0xff]  }
 0x1c2   :  { %1542 = vmatprep.mubr.msk.bf16.mxu0 %vm1781_vm0, %v1779_v1  ;;  %1527 = vmatpush3.bf16.msra.mxu0 %v1669_v25  ;;  %v1287_v25 = vld [vmem:[#allocation6 + $0xa] ss:$0 sm:$0xff] }
 0x1c3   :  { %1528 = vmatprep.subr.bf16.mxu0 %v1779_v1 }
 0x1c6   :  { %1529 = vmatpush3.bf16.msra.mxu0 %v1670_v2 }
 0x1c7   :  { %1530 = vmatprep.subr.bf16.mxu0 %v1779_v1 }
 0x1ca   :  { %1531 = vmatpush3.bf16.msra.mxu0 %v1671_v26 }
 0x1cb   :  { %1532 = vmatprep.subr.bf16.mxu0 %v1779_v1 }
 0x1ce   :  { %1533 = vmatpush3.bf16.msra.mxu0 %v1672_v27 }
 0x1cf   :  { %1534 = vmatprep.subr.bf16.mxu0 %v1779_v1 }
 0x1d2   :  { %1535 = vmatpush3.bf16.msra.mxu0 %v1673_v28 }
 0x1d3   :  { %1536 = vmatprep.subr.bf16.mxu0 %v1779_v1 }
 0x1d6   :  { %1537 = vmatpush3.bf16.msra.mxu0 %v1674_v29 }
 0x1d7   :  { %1538 = vmatprep.subr.bf16.mxu0 %v1779_v1 }
 0x1da   :  { %1539 = vmatpush3.bf16.msra.mxu0 %v1675_v46 }
 0x1db   :  { %1540 = vmatprep.subr.bf16.mxu0 %v1779_v1 }
 0x1de   :  { %1541 = vmatpush3.bf16.msra.mxu0 %v1676_v47  ;;  %v1314_v47 = vld [vmem:[#allocation6 + $0xd] ss:$0 sm:$0xff] }
 0x1df   :  { %1566 = vmatprep.subr.bf16.mxu0 %v1779_v1 }
 0x26f   :  { %v548_v37 = vpop.f32.mrb[4].mxu1 }
 0x270   :  { %v1484_v38 = vpop.f32.mrb[5].mxu1 }
 0x271   :  { %v551_v39 = vpop.f32.mrb[6].mxu1 }
 0x272   :  { %v1485_v40 = vpop.f32.mrb[7].mxu1 }
 0x274   :  { %v426_v31 = vpop.f32.mrb[4].mxu0 }
 0x275   :  { %v427_v32 = vadd.f32 %v1244_v30, %v426_v31  ;;  %v1464_v33 = vpop.f32.mrb[5].mxu0 }
 0x276   :  { %v429_v34 = vpop.f32.mrb[6].mxu0  ;;  %v1700_v33 = vld [vmem:[#allocation4 + $0x278] sm:$0xff]  }
 0x277   :  { %v642_v35 = vpack.c.bf16 %v427_v32, %v427_v32  ;;  %v1465_v36 = vpop.f32.mrb[7].mxu0  ;;  %v1699_v32 = vld [vmem:[#allocation4 + $0x270] sm:$0xff]   ;;  %v1296_v34 = vld [vmem:[#allocation6 + $0xb] ss:$0 sm:$0xff] }
 0x279   :  { %1523 = vmatmul.mubr.bf16.vlgmr.msra.gmra.mrb[8].mxu1 %v642_v35 }
 0x27a   :  { %1562 = vmatprep.mubr.msk.bf16.mxu1 %vm1781_vm0, %v1779_v1  ;;  %1547 = vmatpush3.bf16.msra.mxu1 %v1677_v48 }
 0x27b   :  { %1548 = vmatprep.subr.bf16.mxu1 %v1779_v1 }
 0x27e   :  { %1549 = vmatpush3.bf16.msra.mxu1 %v1678_v49 }
 0x27f   :  { %1550 = vmatprep.subr.bf16.mxu1 %v1779_v1 }
 0x282   :  { %1551 = vmatpush3.bf16.msra.mxu1 %v1679_v50  ;;  %v1315_v50 = vld [vmem:[#allocation6 + $0xe] ss:$0 sm:$0xff] }
 0x283   :  { %1552 = vmatprep.subr.bf16.mxu1 %v1779_v1 }
 0x286   :  { %1553 = vmatpush3.bf16.msra.mxu1 %v1680_v51 }
 0x287   :  { %1554 = vmatprep.subr.bf16.mxu1 %v1779_v1 }
 0x28a   :  { %1555 = vmatpush3.bf16.msra.mxu1 %v1681_v52 }
 0x28b   :  { %1556 = vmatprep.subr.bf16.mxu1 %v1779_v1 }
 0x28e   :  { %1557 = vmatpush3.bf16.msra.mxu1 %v1682_v53 }
 0x28f   :  { %1558 = vmatprep.subr.bf16.mxu1 %v1779_v1 }
 0x292   :  { %1559 = vmatpush3.bf16.msra.mxu1 %v1683_v63 }
 0x293   :  { %1560 = vmatprep.subr.bf16.mxu1 %v1779_v1 }
 0x294   :  { %v636_v41 = vpop.f32.mrb[8].mxu0 }
 0x295   :  { %v637_v42 = vadd.f32 %v636_v41, %v548_v37  ;;  %v1504_v43 = vpop.f32.mrb[9].mxu0 }
 0x296   :  { %v639_v44 = vpop.f32.mrb[10].mxu0  ;;  %1561 = vmatpush3.bf16.msra.mxu1 %v1684_v0 }
 0x297   :  { %v1505_v45 = vpop.f32.mrb[11].mxu0  ;;  %1586 = vmatprep.subr.bf16.mxu1 %v1779_v1 }
 0x34c   :  { %v741_v54 = vpop.f32.mrb[8].mxu1 }
 0x34d   :  { %v747_v56 = vadd.f32 %v741_v54, %v637_v42  ;;  %v1524_v57 = vpop.f32.mrb[9].mxu1  ;;  %v1305_v42 = vld [vmem:[#allocation6 + $0xc] ss:$0 sm:$0xff] }
 0x34e   :  { %v744_v58 = vpop.f32.mrb[10].mxu1 }
 0x34f   :  { %v753_v59 = vadd.f32 %v1277_v55, %v747_v56  ;;  %v1525_v60 = vpop.f32.mrb[11].mxu1 }
 0x351   :  { %v754_v61 = vmax.f32 %v753_v59, 0.0 }
 0x353   :  { %v755_v62 = vpack.c.bf16 %v754_v61, %v754_v61 }
 0x355   :  { %1543 = vmatmul.mubr.bf16.vlgmr.msra.gmra.mrb[12].mxu0 %v755_v62 }
 0x356   :  { %1582 = vmatprep.mubr.msk.bf16.mxu0 %vm1781_vm0, %v1779_v1  ;;  %1567 = vmatpush3.bf16.msra.mxu0 %v1685_v3 }
 0x357   :  { %1568 = vmatprep.subr.bf16.mxu0 %v1779_v1 }
 0x35a   :  { %1569 = vmatpush3.bf16.msra.mxu0 %v1686_v4 }
 0x35b   :  { %1570 = vmatprep.subr.bf16.mxu0 %v1779_v1 }
 0x35e   :  { %1571 = vmatpush3.bf16.msra.mxu0 %v1687_v5 }
 0x35f   :  { %1572 = vmatprep.subr.bf16.mxu0 %v1779_v1 }
 0x362   :  { %1573 = vmatpush3.bf16.msra.mxu0 %v1688_v6 }
 0x363   :  { %1574 = vmatprep.subr.bf16.mxu0 %v1779_v1 }
 0x366   :  { %1575 = vmatpush3.bf16.msra.mxu0 %v1689_v7 }
 0x367   :  { %1576 = vmatprep.subr.bf16.mxu0 %v1779_v1 }
 0x36a   :  { %1577 = vmatpush3.bf16.msra.mxu0 %v1690_v8 }
 0x36b   :  { %1578 = vmatprep.subr.bf16.mxu0 %v1779_v1 }
 0x36e   :  { %1579 = vmatpush3.bf16.msra.mxu0 %v1691_v17 }
 0x36f   :  { %1580 = vmatprep.subr.bf16.mxu0 %v1779_v1 }
 0x372   :  { %1581 = vmatpush3.bf16.msra.mxu0 %v1692_v18 }
 0x428   :  { %v859_v10 = vpop.f32.mrb[12].mxu0 }
 0x429   :  { %v860_v11 = vadd.f32 %v1278_v9, %v859_v10  ;;  %v1544_v12 = vpop.f32.mrb[13].mxu0 }
 0x42a   :  { %v862_v13 = vpop.f32.mrb[14].mxu0 }
 0x42b   :  { %v865_v14 = vmax.f32 %v860_v11, 0.0  ;;  %v1545_v15 = vpop.f32.mrb[15].mxu0 }
 0x42d   :  { %v866_v16 = vpack.c.bf16 %v865_v14, %v865_v14 }
 0x42f   :  { %1563 = vmatmul.mubr.bf16.vlgmr.msra.gmra.mrb[12].mxu1 %v866_v16 }
 0x430   :  { %1602 = vmatprep.mubr.msk.bf16.mxu1 %vm1781_vm0, %v1779_v1  ;;  %1587 = vmatpush3.bf16.msra.mxu1 %v1693_v19 }
 0x431   :  { %1588 = vmatprep.subr.bf16.mxu1 %v1779_v1 }
 0x434   :  { %1589 = vmatpush3.bf16.msra.mxu1 %v1694_v20 }
 0x435   :  { %1590 = vmatprep.subr.bf16.mxu1 %v1779_v1 }
 0x438   :  { %1591 = vmatpush3.bf16.msra.mxu1 %v1695_v21 }
 0x439   :  { %1592 = vmatprep.subr.bf16.mxu1 %v1779_v1 }
 0x43c   :  { %1593 = vmatpush3.bf16.msra.mxu1 %v1696_v22 }
 0x43d   :  { %1594 = vmatprep.subr.bf16.mxu1 %v1779_v1 }
 0x440   :  { %1595 = vmatpush3.bf16.msra.mxu1 %v1697_v23 }
 0x441   :  { %1596 = vmatprep.subr.bf16.mxu1 %v1779_v1 }
 0x444   :  { %1597 = vmatpush3.bf16.msra.mxu1 %v1698_v24 }
 0x445   :  { %1598 = vmatprep.subr.bf16.mxu1 %v1779_v1 }
 0x448   :  { %1599 = vmatpush3.bf16.msra.mxu1 %v1699_v32 }
 0x449   :  { %1600 = vmatprep.subr.bf16.mxu1 %v1779_v1 }
 0x44c   :  { %1601 = vmatpush3.bf16.msra.mxu1 %v1700_v33 }
 0x502   :  { %v970_v2 = vpop.f32.mrb[12].mxu1 }
 0x503   :  { %v971_v26 = vadd.f32 %v1287_v25, %v970_v2  ;;  %v1564_v27 = vpop.f32.mrb[13].mxu1 }
 0x504   :  { %v973_v28 = vpop.f32.mrb[14].mxu1 }
 0x505   :  { %v976_v29 = vmax.f32 %v971_v26, 0.0  ;;  %v1565_v30 = vpop.f32.mrb[15].mxu1 }
 0x507   :  { %v977_v31 = vpack.c.bf16 %v976_v29, %v976_v29 }
 0x509   :  { %1583 = vmatmul.mubr.bf16.vlgmr.msra.gmra.mrb[16].mxu0 %v977_v31 }
 0x5dc   :  { %v1081_v35 = vpop.f32.mrb[16].mxu0 }
 0x5dd   :  { %v1082_v36 = vadd.f32 %v1296_v34, %v1081_v35  ;;  %v1584_v37 = vpop.f32.mrb[17].mxu0 }
 0x5de   :  { %v1084_v38 = vpop.f32.mrb[18].mxu0 }
 0x5df   :  { %v1087_v39 = vmax.f32 %v1082_v36, 0.0  ;;  %v1585_v40 = vpop.f32.mrb[19].mxu0 }
 0x5e1   :  { %v1088_v41 = vpack.c.bf16 %v1087_v39, %v1087_v39 }
 0x5e3   :  { %1603 = vmatmul.mubr.bf16.vlgmr.msra.gmra.mrb[16].mxu1 %v1088_v41 }
 0x6b6   :  { %v1192_v43 = vpop.f32.mrb[16].mxu1 }
 0x6b7   :  { %v1193_v44 = vadd.f32 %v1305_v42, %v1192_v43  ;;  %v1604_v45 = vpop.f32.mrb[17].mxu1 }
 0x6b8   :  { %v1195_v46 = vpop.f32.mrb[18].mxu1 }
 0x6b9   :  { %v1198_v48 = vmax.f32 %v1193_v44, 0.0  ;;  %v1605_v49 = vpop.f32.mrb[19].mxu1 }
 0x6bb   :  { %v1204_v1 = vmul.f32 %v1314_v47, %v1198_v48 }
 0x6bd   :  { %1205 = vadd.xlane.f32.xlu1 %v1204_v1 }
 0x74a   :  { %v1206_v51 = vpop.xlane.xlu1 %1205 }
 0x74b   :  { %v1212_v52 = vadd.f32 %v1315_v50, %v1206_v51 }
 0x74d   :  { %1214 = vst.msk [vmem:[%s1952_s3] sm:$0xff] %vm1213_vm1, %v1212_v52 }
 0x74e   :  { %1219 = vsyncpa [#allocation3], 1 }
 0x74f   :  { %1220 = vsyncpa [#allocation5], 1 }

</bundles_post_ra>
